<compile_context>
chip_gen: v7x
topology: tpu7x:2x2x1
jax: 0.10.0
libtpu: 0.0.40
codegen_flags: <defaults>
</compile_context>

<pallas_src>
import jax
import jax.numpy as jnp
from jax.experimental import pallas as pl
from jax.experimental.pallas import tpu as pltpu


# ----------------------------------------------------------------------------
# Pallas kernel: lane-dense, fused-output broadcast + concat.
# ----------------------------------------------------------------------------
def _dap_concat_kernel(task_p_ref, gen_p_ref, x_ref, out_ref):
    # task_p_ref / gen_p_ref : (1, P*C)        -- constant across the grid
    # x_ref                  : (Bblk, N*C)     -- current batch block
    # out_ref                : (2, Bblk, T*C)  -- [0]=task-prompted, [1]=general
    pc = task_p_ref.shape[1]
    bblk = x_ref.shape[0]

    x = x_ref[...]  # (Bblk, N*C): loaded once, stored twice.

    # Prompt region: one broadcasted, lane-dense store per output slab,
    # hoisted over the whole batch block (not per batch element).
    out_ref[0, :, :pc] = jnp.broadcast_to(task_p_ref[...], (bblk, pc))
    out_ref[1, :, :pc] = jnp.broadcast_to(gen_p_ref[...], (bblk, pc))

    # x region: lane-dense stores into both slabs.
    out_ref[0, :, pc:] = x
    out_ref[1, :, pc:] = x


def _choose_batch_block(B, out_bytes_per_b, itemsize, target_bytes=1 << 20):
    """Pick a batch block size that
       (a) divides B,
       (b) is a multiple of the sublane granularity (or equals B, using the
           'block == full dim' escape hatch of the (8,128) rule),
       (c) keeps the fused output block near `target_bytes` (~1 MiB) so the
           per-grid-step overhead is amortized without blowing VMEM."""
    # sublanes per native tile: 8 (f32) / 16 (bf16) / 32 (int8)
    sub = max(1, 8 * (4 // max(1, itemsize)))
    want = max(1, target_bytes // max(1, out_bytes_per_b))

    cands = [d for d in range(1, B + 1)
             if B % d == 0 and (d == B or d % sub == 0)]
    fit = [d for d in cands if d <= want]
    bblk = max(fit) if fit else min(cands)  # cands always contains B

    # Megacore: prefer >= 2 grid steps (both TensorCores busy) as long as the
    # block stays at least half of the size target.
    if bblk == B and B > 1:
        smaller = [d for d in cands
                   if d < B and d * out_bytes_per_b * 2 >= target_bytes]
        if smaller:
            bblk = max(smaller)
    return bblk


def dap_concat_pallas(task_prompt_flat, gen_prompt_flat, x_embed):
    """task_prompt_flat, gen_prompt_flat: (P, C); x_embed: (B, N, C).

    Returns (prompted_embedding, gen_prompted_embedding), each (B, P + N, C).
    """
    B, N, C = x_embed.shape
    P, Cp = task_prompt_flat.shape
    assert Cp == C and gen_prompt_flat.shape == (P, C)
    T = P + N
    dtype = x_embed.dtype
    itemsize = jnp.dtype(dtype).itemsize

    # Lane-dense flattened views (contiguous -> free reshapes).
    x_flat = x_embed.reshape(B, N * C)
    task_flat = task_prompt_flat.reshape(1, P * C).astype(dtype)
    gen_flat = gen_prompt_flat.reshape(1, P * C).astype(dtype)

    out_bytes_per_b = 2 * T * C * itemsize  # fused (task+gen) bytes per row
    bblk = _choose_batch_block(B, out_bytes_per_b, itemsize)
    grid = (B // bblk,)

    # Double-buffered live bytes: x block + fused output block + prompt tiles.
    # Budget against v7x's smaller VMEM (64 MiB physical / 32 MiB scoped).
    live_bytes = 2 * (bblk * N * C + 2 * bblk * T * C + 2 * P * C) * itemsize
    vmem_limit = int(min(max(live_bytes * 3, 16 << 20), 32 << 20))

    out_fused = pl.pallas_call(
        _dap_concat_kernel,
        out_shape=jax.ShapeDtypeStruct((2, B, T * C), dtype),
        grid_spec=pltpu.PrefetchScalarGridSpec(
            num_scalar_prefetch=0,
            grid=grid,
            in_specs=[
                # Full prompt rows, identical for every grid step (no re-tile).
                pl.BlockSpec((1, P * C), lambda b: (0, 0)),
                pl.BlockSpec((1, P * C), lambda b: (0, 0)),
                # A block of batch rows of x per grid step.
                pl.BlockSpec((bblk, N * C), lambda b: (b, 0)),
            ],
            # Single fused output slab: [0]=task-prompted, [1]=general.
            out_specs=pl.BlockSpec((2, bblk, T * C), lambda b: (0, b, 0)),
        ),
        compiler_params=pltpu.CompilerParams(
            dimension_semantics=("parallel",),
            vmem_limit_bytes=vmem_limit,
        ),
    )(task_flat, gen_flat, x_flat)

    out_fused = out_fused.reshape(2, B, T, C)
    return out_fused[0], out_fused[1]


# ----------------------------------------------------------------------------
# DAP module (parameters + forward), mirroring the PyTorch __init__/forward.
# ----------------------------------------------------------------------------
class DAP:
    def __init__(self, key, length=5, embed_dim=32, prompt_pool=True,
                 prompt_key=True, pool_size=4, top_k=2, tasklength=3,
                 prompt_init="uniform", prompt_key_init="uniform",
                 dtype=jnp.float32):
        self.length = length
        self.embed_dim = embed_dim
        self.pool_size = pool_size
        self.top_k = top_k
        self.tasklength = tasklength

        k_pool, k_task, k_gen, k_key = jax.random.split(key, 4)

        if prompt_init == "zero":
            self.prompt = jnp.zeros((pool_size, length, embed_dim), dtype)
            self.taskprompt = jnp.zeros(
                (tasklength, top_k, length, embed_dim), dtype)
            self.generalprompt = jnp.zeros((top_k, length, embed_dim), dtype)
        else:  # 'uniform' -> U(-1, 1), matching nn.init.uniform_(-1, 1)
            self.prompt = jax.random.uniform(
                k_pool, (pool_size, length, embed_dim), dtype, -1.0, 1.0)
            self.taskprompt = jax.random.uniform(
                k_task, (tasklength, top_k, length, embed_dim), dtype, -1.0, 1.0)
            self.generalprompt = jax.random.uniform(
                k_gen, (top_k, length, embed_dim), dtype, -1.0, 1.0)

        if prompt_key:
            if prompt_key_init == "zero":
                self.prompt_key = jnp.zeros((pool_size, embed_dim), dtype)
            else:
                self.prompt_key = jax.random.uniform(
                    k_key, (pool_size, embed_dim), dtype, -1.0, 1.0)
        else:
            self.prompt_key = jnp.mean(self.prompt, axis=1)

    def forward(self, x_embed, prompt_mask=None, cls_features=None, taskid=0):
        out = {}
        top_k, length, c = self.taskprompt[taskid].shape
        P = top_k * length

        task_flat = self.taskprompt[taskid].reshape(P, c)
        gen_flat = self.generalprompt.reshape(P, c)

        prompted, gen_prompted = dap_concat_pallas(task_flat, gen_flat, x_embed)

        out["total_prompt_len"] = P
        out["prompted_embedding"] = prompted
        out["gen_total_prompt_len"] = P
        out["gen_prompted_embedding"] = gen_prompted
        return out


# ----------------------------------------------------------------------------
# Pure-JAX reference for verification.
# ----------------------------------------------------------------------------
def _reference(task_flat, gen_flat, x_embed):
    B = x_embed.shape[0]
    task_b = jnp.broadcast_to(task_flat[None], (B,) + task_flat.shape)
    gen_b = jnp.broadcast_to(gen_flat[None], (B,) + gen_flat.shape)
    return (jnp.concatenate([task_b, x_embed], axis=1),
            jnp.concatenate([gen_b, x_embed], axis=1))


if __name__ == "__main__":
    key = jax.random.PRNGKey(0)
    k_params, k_x, k_x2 = jax.random.split(key, 3)

    # --- Case 1: tiny shapes, f32 (batch=2, seq=8, embed_dim=32) ------------
    B, N, C = 2, 8, 32
    dap = DAP(k_params, length=5, embed_dim=C, prompt_pool=True,
              prompt_key=True, pool_size=4, top_k=2, tasklength=3)

    x_embed = jax.random.normal(k_x, (B, N, C), jnp.float32)

    out = dap.forward(x_embed, taskid=1)
    jax.block_until_ready(out["prompted_embedding"])
    jax.block_until_ready(out["gen_prompted_embedding"])

    P = dap.top_k * dap.length
    task_flat = dap.taskprompt[1].reshape(P, C)
    gen_flat = dap.generalprompt.reshape(P, C)
    ref_task, ref_gen = _reference(task_flat, gen_flat, x_embed)

    assert out["total_prompt_len"] == P
    assert out["gen_total_prompt_len"] == P
    assert out["prompted_embedding"].shape == (B, P + N, C)
    assert out["gen_prompted_embedding"].shape == (B, P + N, C)
    assert jnp.allclose(out["prompted_embedding"], ref_task, atol=1e-6)
    assert jnp.allclose(out["gen_prompted_embedding"], ref_gen, atol=1e-6)

    # --- Case 2: small bf16 case (exercises packed-dtype block sizing) ------
    B2, N2, C2 = 8, 16, 128
    x2 = jax.random.normal(k_x2, (B2, N2, C2), jnp.float32).astype(jnp.bfloat16)
    t2 = jax.random.uniform(jax.random.PRNGKey(7), (10, C2),
                            jnp.float32, -1.0, 1.0).astype(jnp.bfloat16)
    g2 = jax.random.uniform(jax.random.PRNGKey(8), (10, C2),
                            jnp.float32, -1.0, 1.0).astype(jnp.bfloat16)
    p_task2, p_gen2 = dap_concat_pallas(t2, g2, x2)
    jax.block_until_ready(p_task2)
    r_task2, r_gen2 = _reference(t2, g2, x2)
    assert jnp.array_equal(p_task2, r_task2)   # pure data movement -> exact
    assert jnp.array_equal(p_gen2, r_gen2)

    print("KERNEL_OK")
</pallas_src>

<mosaic_0001>
module attributes {stable_mosaic.version = 11 : i64} {
  func.func @_dap_concat_kernel(%arg0: i32, %arg1: memref<1x320xf32, #tpu.memory_space<vmem>>, %arg2: memref<1x320xf32, #tpu.memory_space<vmem>>, %arg3: memref<2x256xf32, #tpu.memory_space<vmem>>, %arg4: memref<2x2x576xf32, #tpu.memory_space<vmem>>) attributes {dimension_semantics = [#tpu.dimension_semantics<parallel>], iteration_bounds = array<i64: 1>, scalar_prefetch = 0 : i64, scratch_operands = 0 : i64, tpu.core_type = #tpu.core_type<tc>, window_params = [{pipeline_mode = #tpu.pipeline_mode<synchronous>, transform_indices = @transform_0, window_bounds = array<i64: 1, 320>}, {pipeline_mode = #tpu.pipeline_mode<synchronous>, transform_indices = @transform_1, window_bounds = array<i64: 1, 320>}, {transform_indices = @transform_2, window_bounds = array<i64: 2, 256>}, {transform_indices = @transform_3, window_bounds = array<i64: 2, 2, 576>}]} {
    %c0 = arith.constant 0 : index
    %c0_0 = arith.constant 0 : index
    %0 = vector.load %arg3[%c0, %c0_0] : memref<2x256xf32, #tpu.memory_space<vmem>>, vector<2x256xf32>
    %c0_1 = arith.constant 0 : index
    %c0_2 = arith.constant 0 : index
    %1 = vector.load %arg1[%c0_1, %c0_2] : memref<1x320xf32, #tpu.memory_space<vmem>>, vector<1x320xf32>
    %2 = vector.shape_cast %1 : vector<1x320xf32> to vector<1x320xf32>
    %3 = vector.broadcast %2 : vector<1x320xf32> to vector<2x320xf32>
    %c0_3 = arith.constant 0 : index
    %c0_4 = arith.constant 0 : index
    %c0_5 = arith.constant 0 : index
    %4 = vector.load %arg4[%c0_3, %c0_4, %c0_5] : memref<2x2x576xf32, #tpu.memory_space<vmem>>, vector<1x2x320xf32>
    %5 = vector.shape_cast %4 : vector<1x2x320xf32> to vector<2x320xf32>
    %6 = vector.shape_cast %3 : vector<2x320xf32> to vector<1x2x320xf32>
    tpu.vector_store %arg4[%c0_3, %c0_4, %c0_5], %6 {strides = array<i32>} : memref<2x2x576xf32, #tpu.memory_space<vmem>>, vector<1x2x320xf32>,
    %c0_6 = arith.constant 0 : index
    %c0_7 = arith.constant 0 : index
    %7 = vector.load %arg2[%c0_6, %c0_7] : memref<1x320xf32, #tpu.memory_space<vmem>>, vector<1x320xf32>
    %8 = vector.shape_cast %7 : vector<1x320xf32> to vector<1x320xf32>
    %9 = vector.broadcast %8 : vector<1x320xf32> to vector<2x320xf32>
    %c1 = arith.constant 1 : index
    %c0_8 = arith.constant 0 : index
    %c0_9 = arith.constant 0 : index
    %10 = vector.load %arg4[%c1, %c0_8, %c0_9] : memref<2x2x576xf32, #tpu.memory_space<vmem>>, vector<1x2x320xf32>
    %11 = vector.shape_cast %10 : vector<1x2x320xf32> to vector<2x320xf32>
    %12 = vector.shape_cast %9 : vector<2x320xf32> to vector<1x2x320xf32>
    tpu.vector_store %arg4[%c1, %c0_8, %c0_9], %12 {strides = array<i32>} : memref<2x2x576xf32, #tpu.memory_space<vmem>>, vector<1x2x320xf32>,
    %c0_10 = arith.constant 0 : index
    %c0_11 = arith.constant 0 : index
    %c320 = arith.constant 320 : index
    %13 = vector.load %arg4[%c0_10, %c0_11, %c320] : memref<2x2x576xf32, #tpu.memory_space<vmem>>, vector<1x2x256xf32>
    %14 = vector.shape_cast %13 : vector<1x2x256xf32> to vector<2x256xf32>
    %15 = vector.shape_cast %0 : vector<2x256xf32> to vector<1x2x256xf32>
    tpu.vector_store %arg4[%c0_10, %c0_11, %c320], %15 {strides = array<i32>} : memref<2x2x576xf32, #tpu.memory_space<vmem>>, vector<1x2x256xf32>,
    %c1_12 = arith.constant 1 : index
    %c0_13 = arith.constant 0 : index
    %c320_14 = arith.constant 320 : index
    %16 = vector.load %arg4[%c1_12, %c0_13, %c320_14] : memref<2x2x576xf32, #tpu.memory_space<vmem>>, vector<1x2x256xf32>
    %17 = vector.shape_cast %16 : vector<1x2x256xf32> to vector<2x256xf32>
    %18 = vector.shape_cast %0 : vector<2x256xf32> to vector<1x2x256xf32>
    tpu.vector_store %arg4[%c1_12, %c0_13, %c320_14], %18 {strides = array<i32>} : memref<2x2x576xf32, #tpu.memory_space<vmem>>, vector<1x2x256xf32>,
    return
  }
  func.func @transform_0(%arg0: i32) -> (i32, i32) {
    %c0_i32 = arith.constant 0 : i32
    %c0_i32_0 = arith.constant 0 : i32
    %c0_i32_1 = arith.constant 0 : i32
    return %c0_i32, %c0_i32_0 : i32, i32
  }
  func.func @transform_1(%arg0: i32) -> (i32, i32) {
    %c0_i32 = arith.constant 0 : i32
    %c0_i32_0 = arith.constant 0 : i32
    %c0_i32_1 = arith.constant 0 : i32
    return %c0_i32, %c0_i32_0 : i32, i32
  }
  func.func @transform_2(%arg0: i32) -> (i32, i32) {
    %c0_i32 = arith.constant 0 : i32
    %c0_i32_0 = arith.constant 0 : i32
    return %arg0, %c0_i32 : i32, i32
  }
  func.func @transform_3(%arg0: i32) -> (i32, i32, i32) {
    %c0_i32 = arith.constant 0 : i32
    %c0_i32_0 = arith.constant 0 : i32
    %c0_i32_1 = arith.constant 0 : i32
    return %c0_i32, %arg0, %c0_i32_0 : i32, i32, i32
  }
}

</mosaic_0001>

<bundles_post_ra>
// kernel: tpu_custom_call.1
= control target key start
LH: loop header
LB: loop body
LE: loop exit
PB: predicated region body
PF: predicated region fallthrough
CT: control target
= control target key end

     0   :  { %8 = vsyncpa [#allocation3], 0  ;;  %s249_s0 = inlined_call_operand.hbm [shape: f32[1,320], index: 0, kind: input, shape index: {}]   ;;  %s250_s1 = inlined_call_operand.vmem [shape: f32[1,320], index: 1, kind: input, shape index: {}]   ;;  %s251_s2 = inlined_call_operand.vmem [shape: f32[2,256], index: 2, kind: input, shape index: {}]   ;;  %s252_s3 = inlined_call_operand.hbm [shape: f32[2,2,576], index: 3, kind: output, shape index: {}]  }
   0x1   :  { %9 = vsyncpa [#allocation4], 0  ;;  %s181_s12 = smov [#allocation2]   ;;  %s133_s16 = scalar_lea.hbm %s249_s0, 48 }
   0x2   :  { %s16_s13 = sshll.u32 %s181_s12, 4  ;;  %p134_p0 = scmp.ne.s32.totalorder %s249_s0, %s133_s16  ;;  %s17_s13 = int_to_ptr.vmem [resolvable:$true] %s16_s13 }
   0x3   :  { %p137_p1 = scmp.lt.u32.totalorder %s133_s16, %s249_s0 }
   0x5   :  { %p139_p2 = pnand %p137_p1, %p134_p0 }
   0x7   :  { %142 = shalt.err (!%p139_p2)
}
   0x8   :  { %s143_s21 = scalar_lea.vmem %s17_s13, 48  ;;  %s147_s22 = scalar_lea.vmem %s17_s13, 64 }
   0x9   :  { %p144_p3 = scmp.ne.s32.totalorder %s17_s13, %s143_s21  ;;  %p148_p4 = scmp.lt.s32.totalorder %s17_s13, %s17_s13 }
   0xa   :  { %p149_p5 = scmp.lt.s32.totalorder %s147_s22, %s143_s21 }
   0xc   :  { %p150_p6 = por %p149_p5, %p148_p4 }
   0xe   :  { %p151_p7 = pnand %p150_p6, %p144_p3 }
  0x10   :  { %154 = shalt.err (!%p151_p7)
}
  0x11   :  { %19 = dma.hbm_to_vmem [thread:$0]  %s249_s0, 48, %s17_s13, [#allocation3]  }
  0x12   :  { %177 = dma.done.wait [#allocation3], 48  }
  0x13   :  { %178 = vsyncadd [#allocation3], 4294967248  ;;  %v30_v0 = vlaneseq  ;;  %v182_v1 = vmov 1983009808   ;;  %vm60_vm0 = vcmask 1043458   ;;  %vm62_vm1 = vcmask 521220  }
  0x14   :  { %v44_v2 = vunpack.c.l.s4 %v182_v1  ;;  %vm105_vm2 = vcmask 1041920   ;;  %vm59_vm5 = vcmask 1041408   ;;  %v27_v10 = vld [vmem:[%s251_s2] sm:$0xf]  ;;  %v28_v11 = vld [vmem:[#allocation2] sm:$0x7] }
  0x15   :  { %v31_v3 = vshrl.u32 %v30_v0, 7  ;;  %vm106_vm3 = vmor %vm60_vm0, %vm105_vm2  ;;  %v65_v12 = vld [vmem:[%s250_s1] sm:$0x7]  ;;  %s183_s28 = smov 64   ;;  %s184_s1 = smov [#allocation5]   ;;  %vm102_vm8 = vcmask 523264  }
  0x16   :  { %v45_v4 = vunpack.c.0.s8 %v44_v2  ;;  %vm221_vm4 = vmor %vm62_vm1, %vm106_vm3  ;;  %99 = vrot.lane.b32.xlu0 %v27_v10, %s183_s28  ;;  %s115_s2 = sshll.u32 %s184_s1, 4  ;;  %s116_s2 = int_to_ptr.vmem [resolvable:$true] %s115_s2 }
  0x17   :  { %v32_v5 = vsub.s32 0, %v31_v3  ;;  %v36_v6 = vsub.s32 1, %v31_v3  ;;  %v40_v7 = vsub.s32 2, %v31_v3  ;;  %vm61_vm6 = vmor %vm60_vm0, %vm59_vm5  ;;  %s155_s29 = scalar_lea.vmem %s116_s2, 320  ;;  %p160_p9 = scmp.lt.s32.totalorder %s116_s2, %s116_s2 }
  0x18   :  { %v48_v9 = vsub.s32 %v45_v4, %v31_v3  ;;  %vm63_vm7 = vmor %vm62_vm1, %vm61_vm6  ;;  %p156_p8 = scmp.ne.s32.totalorder %s116_s2, %s155_s29  ;;  %p161_p10 = scmp.lt.s32.totalorder %s155_s29, %s155_s29 }
  0x19   :  { %v33_v13 = vrot.slane %v28_v11, %v32_v5  ;;  %v37_v14 = vrot.slane %v28_v11, %v36_v6  ;;  %v41_v15 = vrot.slane %v28_v11, %v40_v7  ;;  %v70_v16 = vrot.slane %v65_v12, %v32_v5 }
  0x1a   :  { %v74_v17 = vrot.slane %v65_v12, %v36_v6  ;;  %v78_v18 = vrot.slane %v65_v12, %v40_v7  ;;  %p162_p11 = por %p161_p10, %p160_p9 }
  0x1b   :  { %v42_v19 = vcombine.low %v33_v13, %v37_v14  ;;  %v56_v20 = vrot.slane %v41_v15, %v48_v9 }
  0x1c   :  { %v79_v21 = vcombine.low %v70_v16, %v74_v17  ;;  %v93_v22 = vrot.slane %v78_v18, %v48_v9  ;;  %p163_p12 = pnand %p162_p11, %p156_p8 }
  0x1d   :  { %v49_v23 = vrot.slane %v42_v19, %v48_v9 }
  0x1e   :  { %v86_v24 = vrot.slane %v79_v21, %v48_v9 }
  0x1f   :  { %v57_v25 = vcombine.low %v49_v23, %v56_v20 }
  0x20   :  { %v94_v26 = vcombine.low %v86_v24, %v93_v22 }
  0x21   :  { %64 = vst.msk [vmem:[#allocation5] sm:$0x3f] %vm63_vm7, %v57_v25 }
  0x22   :  { %97 = vst.msk [vmem:[#allocation5 + $0xa] sm:$0x3f] %vm63_vm7, %v94_v26 }
  0x88   :  { %v100_v27 = vpop.permute.xlu0 %99 }
  0x89   :  { %v101_v28 = vrot.slane %v100_v27, 6 }
  0x8b   :  { %v103_v29 = vsel %vm102_vm8, %v101_v28, %v100_v27 }
  0x8c   :  { %108 = vst.msk [vmem:[#allocation5 + $0x4] sm:$0x3f] %vm221_vm4, %v103_v29  ;;  %109 = vst.msk [vmem:[#allocation5 + $0xe] sm:$0x3f] %vm221_vm4, %v103_v29 }
  0x8d   :  { %166 = shalt.err (!%p163_p12)
}
  0x8e   :  { %s167_s5 = scalar_lea.hbm %s252_s3, 320 }
  0x8f   :  { %p168_p13 = scmp.ne.s32.totalorder %s252_s3, %s167_s5  ;;  %p171_p0 = scmp.lt.u32.totalorder %s167_s5, %s252_s3 }
  0x91   :  { %p173_p1 = pnand %p171_p0, %p168_p13 }
  0x93   :  { %176 = shalt.err (!%p173_p1)
}
  0x94   :  { %s185_s10 = smov 160   ;;  %s186_s11 = smov 10  }
  0x95   :  { %121 = dma.vmem_to_hbm [thread:$0]  %s116_s2, 320, %s252_s3, [#allocation4], %s185_s10, %s185_s10, %s186_s11  }
  0x96   :  { %179 = dma.done.wait [#allocation4], 320  }
  0x97   :  { %180 = vsyncadd [#allocation4], 4294966976 }
  0x98   :  { %125 = vsyncpa [#allocation3], 1 }
  0x99   :  { %126 = vsyncpa [#allocation4], 1 }

</bundles_post_ra>
